<compile_context>
chip_gen: v7x
topology: tpu7x:2x2x1
jax: 0.10.0
libtpu: 0.0.40
codegen_flags: <defaults>
</compile_context>

<pallas_src>
import numpy as np
import jax
import jax.numpy as jnp
from jax.experimental import pallas as pl
from jax.experimental.pallas import tpu as pltpu


def _round_up(n, m):
    return ((n + m - 1) // m) * m


def _make_fused_kernel(n_blocks):
    """All n_blocks residual blocks on one resident (feat, rows) tile."""

    def kernel(x_ref, t_ref, w1x_ref, w1t_ref, b1_ref,
               w2_ref, b2_ref, w3_ref, b3_ref, ts_ref, o_ref):
        x = x_ref[...]                    # (D, TN)   rows on lanes, stays in vregs
        t = t_ref[...]                    # (1, TN)   loaded once, reused per block
        for b in range(n_blocks):          # static unroll over stacked weights
            # Linear(dim+1 -> H1) on concat([x, t]) == W1x^T @ x + W1t^T * t + b1
            h = jnp.dot(w1x_ref[b], x, preferred_element_type=jnp.float32)   # (H1, TN)
            h = jnp.maximum(h + w1t_ref[b] * t + b1_ref[b], 0.0)             # ReLU
            h = jnp.dot(w2_ref[b], h, preferred_element_type=jnp.float32)    # (H2, TN)
            h = jnp.maximum(h + b2_ref[b], 0.0)                              # ReLU
            out = jnp.dot(w3_ref[b], h, preferred_element_type=jnp.float32)  # (D, TN)
            out = out + b3_ref[b]
            tau = jnp.tanh(ts_ref[b] * t)                                    # TimeTanh
            x = x + tau * out                                                # residual
        o_ref[...] = x                     # single lane-dense store
    return kernel


def resnet_flow_fused(xT, tT, stackedT):
    """All residual blocks in one pallas_call. xT: (D, N), tT: (1, N)."""
    D, N = xT.shape
    n_blocks = stackedT["w1x"].shape[0]

    TN = min(2048, _round_up(N, 128))          # lane-aligned row tile
    N_pad = _round_up(N, TN)
    if N_pad != N:
        xT = jnp.pad(xT, ((0, 0), (0, N_pad - N)))
        tT = jnp.pad(tT, ((0, 0), (0, N_pad - N)))
    grid = (N_pad // TN,)

    def wspec(arr):                             # full-array VMEM block, never re-fetched
        return pl.BlockSpec(arr.shape, lambda i: (0, 0, 0))

    out = pl.pallas_call(
        _make_fused_kernel(n_blocks),
        out_shape=jax.ShapeDtypeStruct((D, N_pad), jnp.float32),
        grid=grid,
        in_specs=[
            pl.BlockSpec((D, TN), lambda i: (0, i)),    # x tile (rows on lanes)
            pl.BlockSpec((1, TN), lambda i: (0, i)),    # t tile
            wspec(stackedT["w1x"]),                     # (nb, H1, D)
            wspec(stackedT["w1t"]),                     # (nb, H1, 1)
            wspec(stackedT["b1"]),                      # (nb, H1, 1)
            wspec(stackedT["w2"]),                      # (nb, H2, H1)
            wspec(stackedT["b2"]),                      # (nb, H2, 1)
            wspec(stackedT["w3"]),                      # (nb, D, H2)
            wspec(stackedT["b3"]),                      # (nb, D, 1)
            wspec(stackedT["tscale"]),                  # (nb, D, 1)
        ],
        out_specs=pl.BlockSpec((D, TN), lambda i: (0, i)),
        compiler_params=pltpu.CompilerParams(
            dimension_semantics=("parallel",)),         # row axis shards across TCs
    )(xT, tT, stackedT["w1x"], stackedT["w1t"], stackedT["b1"],
      stackedT["w2"], stackedT["b2"], stackedT["w3"], stackedT["b3"],
      stackedT["tscale"])
    return out[:, :N]


def _spectral_normalize(w):
    # invertible=True wraps each Linear in nn.utils.spectral_norm: W / sigma_max(W).
    sigma = float(np.linalg.svd(np.asarray(w), compute_uv=False)[0])
    return w / sigma


def init_params(key, dim, n_layers, hidden_dims, invertible=True):
    assert len(hidden_dims) == 2, "kernel hard-codes a 2-hidden-layer MLP"
    H1, H2 = hidden_dims
    n_blocks = n_layers * n_layers   # outer module: n_layers flows x n_layers blocks each

    def lin(k, fan_in, fan_out):
        kw, kb = jax.random.split(k)
        bound = 1.0 / np.sqrt(fan_in)        # PyTorch nn.Linear default init
        w = jax.random.uniform(kw, (fan_in, fan_out), jnp.float32, -bound, bound)
        b = jax.random.uniform(kb, (1, fan_out), jnp.float32, -bound, bound)
        return w, b

    blocks = []
    for _ in range(n_blocks):
        key, k1, k2, k3, k4 = jax.random.split(key, 5)
        w1, b1 = lin(k1, dim + 1, H1)
        w2, b2 = lin(k2, H1, H2)
        w3, b3 = lin(k3, H2, dim)
        if invertible:
            w1 = _spectral_normalize(w1)
            w2 = _spectral_normalize(w2)
            w3 = _spectral_normalize(w3)
        tscale = jax.random.normal(k4, (1, dim), jnp.float32)
        blocks.append(dict(w1x=w1[:dim], w1t=w1[dim:dim + 1], b1=b1,
                           w2=w2, b2=b2, w3=w3, b3=b3, tscale=tscale))
    return blocks


def stack_blocks_transposed(blocks):
    """Stack per-block params (transposed to weights-stationary layout) along axis 0."""
    return {k: jnp.stack([jnp.asarray(b[k]).T for b in blocks], axis=0)
            for k in ("w1x", "w1t", "b1", "w2", "b2", "w3", "b3", "tscale")}


def resnet_flow_forward(x, t, stackedT):
    """x: (B, Sx, D) with Sx in {1, S}; t: (B, S, 1). Returns (B, S, D)."""
    if x.shape[-2] == 1:
        x = jnp.repeat(x, t.shape[-2], axis=-2)      # repeat_interleave along seq
    B, S, D = x.shape
    xT = x.reshape(B * S, D).T                        # (D, N): features->sublanes, rows->lanes
    tT = t.reshape(B * S, 1).T                        # (1, N)
    yT = resnet_flow_fused(xT, tT, stackedT)          # all blocks in one kernel
    return yT.T.reshape(B, S, D)


def reference_forward(x, t, blocks):
    """Pure-JAX reference mirroring the PyTorch module."""
    if x.shape[-2] == 1:
        x = jnp.repeat(x, t.shape[-2], axis=-2)
    for p in blocks:
        xt = jnp.concatenate([x, jnp.broadcast_to(t, x.shape[:-1] + (1,))], axis=-1)
        w1 = jnp.concatenate([p["w1x"], p["w1t"]], axis=0)
        h = jnp.maximum(xt @ w1 + p["b1"], 0.0)
        h = jnp.maximum(h @ p["w2"] + p["b2"], 0.0)
        out = h @ p["w3"] + p["b3"]
        tau = jnp.tanh(t * p["tscale"])
        x = x + tau * out
    return x


if __name__ == "__main__":
    dim, n_layers, hidden_dims = 4, 2, [32, 32]      # time_net="TimeTanh", invertible=True
    B, S = 2, 8

    key = jax.random.PRNGKey(0)
    kx, kt, kp = jax.random.split(key, 3)
    x = jax.random.normal(kx, (B, 1, dim), jnp.float32)      # exercises the repeat path
    t = jax.random.uniform(kt, (B, S, 1), jnp.float32)
    blocks = init_params(kp, dim, n_layers, hidden_dims, invertible=True)
    stackedT = stack_blocks_transposed(blocks)

    fwd = jax.jit(lambda x_, t_: resnet_flow_forward(x_, t_, stackedT))
    y = jax.block_until_ready(fwd(x, t))

    y_ref = reference_forward(x, t, blocks)
    np.testing.assert_allclose(np.asarray(y), np.asarray(y_ref), rtol=1e-5, atol=1e-5)
    print("KERNEL_OK")
</pallas_src>

<mosaic_0001>
module attributes {stable_mosaic.version = 11 : i64} {
  func.func @kernel(%arg0: i32, %arg1: memref<4x128xf32, #tpu.memory_space<vmem>>, %arg2: memref<1x128xf32, #tpu.memory_space<vmem>>, %arg3: memref<4x32x4xf32, #tpu.memory_space<vmem>>, %arg4: memref<4x32x1xf32, #tpu.memory_space<vmem>>, %arg5: memref<4x32x1xf32, #tpu.memory_space<vmem>>, %arg6: memref<4x32x32xf32, #tpu.memory_space<vmem>>, %arg7: memref<4x32x1xf32, #tpu.memory_space<vmem>>, %arg8: memref<4x4x32xf32, #tpu.memory_space<vmem>>, %arg9: memref<4x4x1xf32, #tpu.memory_space<vmem>>, %arg10: memref<4x4x1xf32, #tpu.memory_space<vmem>>, %arg11: memref<4x128xf32, #tpu.memory_space<vmem>>) attributes {dimension_semantics = [#tpu.dimension_semantics<parallel>], iteration_bounds = array<i64: 1>, scalar_prefetch = 0 : i64, scratch_operands = 0 : i64, tpu.core_type = #tpu.core_type<tc>, window_params = [{transform_indices = @transform_0, window_bounds = array<i64: 4, 128>}, {transform_indices = @transform_1, window_bounds = array<i64: 1, 128>}, {pipeline_mode = #tpu.pipeline_mode<synchronous>, transform_indices = @transform_2, window_bounds = array<i64: 4, 32, 4>}, {pipeline_mode = #tpu.pipeline_mode<synchronous>, transform_indices = @transform_3, window_bounds = array<i64: 4, 32, 1>}, {pipeline_mode = #tpu.pipeline_mode<synchronous>, transform_indices = @transform_4, window_bounds = array<i64: 4, 32, 1>}, {pipeline_mode = #tpu.pipeline_mode<synchronous>, transform_indices = @transform_5, window_bounds = array<i64: 4, 32, 32>}, {pipeline_mode = #tpu.pipeline_mode<synchronous>, transform_indices = @transform_6, window_bounds = array<i64: 4, 32, 1>}, {pipeline_mode = #tpu.pipeline_mode<synchronous>, transform_indices = @transform_7, window_bounds = array<i64: 4, 4, 32>}, {pipeline_mode = #tpu.pipeline_mode<synchronous>, transform_indices = @transform_8, window_bounds = array<i64: 4, 4, 1>}, {pipeline_mode = #tpu.pipeline_mode<synchronous>, transform_indices = @transform_9, window_bounds = array<i64: 4, 4, 1>}, {transform_indices = @transform_10, window_bounds = array<i64: 4, 128>}]} {
    %c0 = arith.constant 0 : index
    %c0_0 = arith.constant 0 : index
    %0 = vector.load %arg1[%c0, %c0_0] : memref<4x128xf32, #tpu.memory_space<vmem>>, vector<4x128xf32>
    %c0_1 = arith.constant 0 : index
    %c0_2 = arith.constant 0 : index
    %1 = vector.load %arg2[%c0_1, %c0_2] : memref<1x128xf32, #tpu.memory_space<vmem>>, vector<1x128xf32>
    %c0_3 = arith.constant 0 : index
    %c0_4 = arith.constant 0 : index
    %c0_5 = arith.constant 0 : index
    %2 = vector.load %arg3[%c0_3, %c0_4, %c0_5] : memref<4x32x4xf32, #tpu.memory_space<vmem>>, vector<1x32x4xf32>
    %3 = vector.shape_cast %2 : vector<1x32x4xf32> to vector<32x4xf32>
    %cst = arith.constant dense<0.000000e+00> : vector<32x128xf32>
    %4 = tpu.matmul %3, %0, %cst {dimension_numbers = #tpu.dot_dimension_numbers<[1], [0], [0], [1], [0, 0, 1, 1], [], []>} : vector<32x4xf32>, vector<4x128xf32>, vector<32x128xf32> -> vector<32x128xf32>
    %c0_6 = arith.constant 0 : index
    %c0_7 = arith.constant 0 : index
    %c0_8 = arith.constant 0 : index
    %5 = vector.load %arg4[%c0_6, %c0_7, %c0_8] : memref<4x32x1xf32, #tpu.memory_space<vmem>>, vector<1x32x1xf32>
    %6 = vector.shape_cast %5 : vector<1x32x1xf32> to vector<32x1xf32>
    %7 = vector.broadcast %6 : vector<32x1xf32> to vector<32x128xf32>
    %8 = vector.broadcast %1 : vector<1x128xf32> to vector<32x128xf32>
    %9 = arith.mulf %7, %8 : vector<32x128xf32>
    %10 = arith.addf %4, %9 : vector<32x128xf32>
    %c0_9 = arith.constant 0 : index
    %c0_10 = arith.constant 0 : index
    %c0_11 = arith.constant 0 : index
    %11 = vector.load %arg5[%c0_9, %c0_10, %c0_11] : memref<4x32x1xf32, #tpu.memory_space<vmem>>, vector<1x32x1xf32>
    %12 = vector.shape_cast %11 : vector<1x32x1xf32> to vector<32x1xf32>
    %13 = vector.broadcast %12 : vector<32x1xf32> to vector<32x128xf32>
    %14 = arith.addf %10, %13 : vector<32x128xf32>
    %cst_12 = arith.constant 0.000000e+00 : f32
    %15 = vector.broadcast %cst_12 : f32 to vector<32x128xf32>
    %16 = arith.maximumf %14, %15 : vector<32x128xf32>
    %c0_13 = arith.constant 0 : index
    %c0_14 = arith.constant 0 : index
    %c0_15 = arith.constant 0 : index
    %17 = vector.load %arg6[%c0_13, %c0_14, %c0_15] : memref<4x32x32xf32, #tpu.memory_space<vmem>>, vector<1x32x32xf32>
    %18 = vector.shape_cast %17 : vector<1x32x32xf32> to vector<32x32xf32>
    %cst_16 = arith.constant dense<0.000000e+00> : vector<32x128xf32>
    %19 = tpu.matmul %18, %16, %cst_16 {dimension_numbers = #tpu.dot_dimension_numbers<[1], [0], [0], [1], [0, 0, 1, 1], [], []>} : vector<32x32xf32>, vector<32x128xf32>, vector<32x128xf32> -> vector<32x128xf32>
    %c0_17 = arith.constant 0 : index
    %c0_18 = arith.constant 0 : index
    %c0_19 = arith.constant 0 : index
    %20 = vector.load %arg7[%c0_17, %c0_18, %c0_19] : memref<4x32x1xf32, #tpu.memory_space<vmem>>, vector<1x32x1xf32>
    %21 = vector.shape_cast %20 : vector<1x32x1xf32> to vector<32x1xf32>
    %22 = vector.broadcast %21 : vector<32x1xf32> to vector<32x128xf32>
    %23 = arith.addf %19, %22 : vector<32x128xf32>
    %cst_20 = arith.constant 0.000000e+00 : f32
    %24 = vector.broadcast %cst_20 : f32 to vector<32x128xf32>
    %25 = arith.maximumf %23, %24 : vector<32x128xf32>
    %c0_21 = arith.constant 0 : index
    %c0_22 = arith.constant 0 : index
    %c0_23 = arith.constant 0 : index
    %26 = vector.load %arg8[%c0_21, %c0_22, %c0_23] : memref<4x4x32xf32, #tpu.memory_space<vmem>>, vector<1x4x32xf32>
    %27 = vector.shape_cast %26 : vector<1x4x32xf32> to vector<4x32xf32>
    %cst_24 = arith.constant dense<0.000000e+00> : vector<4x128xf32>
    %28 = tpu.matmul %27, %25, %cst_24 {dimension_numbers = #tpu.dot_dimension_numbers<[1], [0], [0], [1], [0, 0, 1, 1], [], []>} : vector<4x32xf32>, vector<32x128xf32>, vector<4x128xf32> -> vector<4x128xf32>
    %c0_25 = arith.constant 0 : index
    %c0_26 = arith.constant 0 : index
    %c0_27 = arith.constant 0 : index
    %29 = vector.load %arg9[%c0_25, %c0_26, %c0_27] : memref<4x4x1xf32, #tpu.memory_space<vmem>>, vector<1x4x1xf32>
    %30 = vector.shape_cast %29 : vector<1x4x1xf32> to vector<4x1xf32>
    %31 = vector.broadcast %30 : vector<4x1xf32> to vector<4x128xf32>
    %32 = arith.addf %28, %31 : vector<4x128xf32>
    %c0_28 = arith.constant 0 : index
    %c0_29 = arith.constant 0 : index
    %c0_30 = arith.constant 0 : index
    %33 = vector.load %arg10[%c0_28, %c0_29, %c0_30] : memref<4x4x1xf32, #tpu.memory_space<vmem>>, vector<1x4x1xf32>
    %34 = vector.shape_cast %33 : vector<1x4x1xf32> to vector<4x1xf32>
    %35 = vector.broadcast %34 : vector<4x1xf32> to vector<4x128xf32>
    %36 = vector.broadcast %1 : vector<1x128xf32> to vector<4x128xf32>
    %37 = arith.mulf %35, %36 : vector<4x128xf32>
    %38 = math.tanh %37 : vector<4x128xf32>
    %39 = arith.mulf %38, %32 : vector<4x128xf32>
    %40 = arith.addf %0, %39 : vector<4x128xf32>
    %c1 = arith.constant 1 : index
    %c0_31 = arith.constant 0 : index
    %c0_32 = arith.constant 0 : index
    %41 = vector.load %arg3[%c1, %c0_31, %c0_32] : memref<4x32x4xf32, #tpu.memory_space<vmem>>, vector<1x32x4xf32>
    %42 = vector.shape_cast %41 : vector<1x32x4xf32> to vector<32x4xf32>
    %cst_33 = arith.constant dense<0.000000e+00> : vector<32x128xf32>
    %43 = tpu.matmul %42, %40, %cst_33 {dimension_numbers = #tpu.dot_dimension_numbers<[1], [0], [0], [1], [0, 0, 1, 1], [], []>} : vector<32x4xf32>, vector<4x128xf32>, vector<32x128xf32> -> vector<32x128xf32>
    %c1_34 = arith.constant 1 : index
    %c0_35 = arith.constant 0 : index
    %c0_36 = arith.constant 0 : index
    %44 = vector.load %arg4[%c1_34, %c0_35, %c0_36] : memref<4x32x1xf32, #tpu.memory_space<vmem>>, vector<1x32x1xf32>
    %45 = vector.shape_cast %44 : vector<1x32x1xf32> to vector<32x1xf32>
    %46 = vector.broadcast %45 : vector<32x1xf32> to vector<32x128xf32>
    %47 = vector.broadcast %1 : vector<1x128xf32> to vector<32x128xf32>
    %48 = arith.mulf %46, %47 : vector<32x128xf32>
    %49 = arith.addf %43, %48 : vector<32x128xf32>
    %c1_37 = arith.constant 1 : index
    %c0_38 = arith.constant 0 : index
    %c0_39 = arith.constant 0 : index
    %50 = vector.load %arg5[%c1_37, %c0_38, %c0_39] : memref<4x32x1xf32, #tpu.memory_space<vmem>>, vector<1x32x1xf32>
    %51 = vector.shape_cast %50 : vector<1x32x1xf32> to vector<32x1xf32>
    %52 = vector.broadcast %51 : vector<32x1xf32> to vector<32x128xf32>
    %53 = arith.addf %49, %52 : vector<32x128xf32>
    %cst_40 = arith.constant 0.000000e+00 : f32
    %54 = vector.broadcast %cst_40 : f32 to vector<32x128xf32>
    %55 = arith.maximumf %53, %54 : vector<32x128xf32>
    %c1_41 = arith.constant 1 : index
    %c0_42 = arith.constant 0 : index
    %c0_43 = arith.constant 0 : index
    %56 = vector.load %arg6[%c1_41, %c0_42, %c0_43] : memref<4x32x32xf32, #tpu.memory_space<vmem>>, vector<1x32x32xf32>
    %57 = vector.shape_cast %56 : vector<1x32x32xf32> to vector<32x32xf32>
    %cst_44 = arith.constant dense<0.000000e+00> : vector<32x128xf32>
    %58 = tpu.matmul %57, %55, %cst_44 {dimension_numbers = #tpu.dot_dimension_numbers<[1], [0], [0], [1], [0, 0, 1, 1], [], []>} : vector<32x32xf32>, vector<32x128xf32>, vector<32x128xf32> -> vector<32x128xf32>
    %c1_45 = arith.constant 1 : index
    %c0_46 = arith.constant 0 : index
    %c0_47 = arith.constant 0 : index
    %59 = vector.load %arg7[%c1_45, %c0_46, %c0_47] : memref<4x32x1xf32, #tpu.memory_space<vmem>>, vector<1x32x1xf32>
    %60 = vector.shape_cast %59 : vector<1x32x1xf32> to vector<32x1xf32>
    %61 = vector.broadcast %60 : vector<32x1xf32> to vector<32x128xf32>
    %62 = arith.addf %58, %61 : vector<32x128xf32>
    %cst_48 = arith.constant 0.000000e+00 : f32
    %63 = vector.broadcast %cst_48 : f32 to vector<32x128xf32>
    %64 = arith.maximumf %62, %63 : vector<32x128xf32>
    %c1_49 = arith.constant 1 : index
    %c0_50 = arith.constant 0 : index
    %c0_51 = arith.constant 0 : index
    %65 = vector.load %arg8[%c1_49, %c0_50, %c0_51] : memref<4x4x32xf32, #tpu.memory_space<vmem>>, vector<1x4x32xf32>
    %66 = vector.shape_cast %65 : vector<1x4x32xf32> to vector<4x32xf32>
    %cst_52 = arith.constant dense<0.000000e+00> : vector<4x128xf32>
    %67 = tpu.matmul %66, %64, %cst_52 {dimension_numbers = #tpu.dot_dimension_numbers<[1], [0], [0], [1], [0, 0, 1, 1], [], []>} : vector<4x32xf32>, vector<32x128xf32>, vector<4x128xf32> -> vector<4x128xf32>
    %c1_53 = arith.constant 1 : index
    %c0_54 = arith.constant 0 : index
    %c0_55 = arith.constant 0 : index
    %68 = vector.load %arg9[%c1_53, %c0_54, %c0_55] : memref<4x4x1xf32, #tpu.memory_space<vmem>>, vector<1x4x1xf32>
    %69 = vector.shape_cast %68 : vector<1x4x1xf32> to vector<4x1xf32>
    %70 = vector.broadcast %69 : vector<4x1xf32> to vector<4x128xf32>
    %71 = arith.addf %67, %70 : vector<4x128xf32>
    %c1_56 = arith.constant 1 : index
    %c0_57 = arith.constant 0 : index
    %c0_58 = arith.constant 0 : index
    %72 = vector.load %arg10[%c1_56, %c0_57, %c0_58] : memref<4x4x1xf32, #tpu.memory_space<vmem>>, vector<1x4x1xf32>
    %73 = vector.shape_cast %72 : vector<1x4x1xf32> to vector<4x1xf32>
    %74 = vector.broadcast %73 : vector<4x1xf32> to vector<4x128xf32>
    %75 = vector.broadcast %1 : vector<1x128xf32> to vector<4x128xf32>
    %76 = arith.mulf %74, %75 : vector<4x128xf32>
    %77 = math.tanh %76 : vector<4x128xf32>
    %78 = arith.mulf %77, %71 : vector<4x128xf32>
    %79 = arith.addf %40, %78 : vector<4x128xf32>
    %c2 = arith.constant 2 : index
    %c0_59 = arith.constant 0 : index
    %c0_60 = arith.constant 0 : index
    %80 = vector.load %arg3[%c2, %c0_59, %c0_60] : memref<4x32x4xf32, #tpu.memory_space<vmem>>, vector<1x32x4xf32>
    %81 = vector.shape_cast %80 : vector<1x32x4xf32> to vector<32x4xf32>
    %cst_61 = arith.constant dense<0.000000e+00> : vector<32x128xf32>
    %82 = tpu.matmul %81, %79, %cst_61 {dimension_numbers = #tpu.dot_dimension_numbers<[1], [0], [0], [1], [0, 0, 1, 1], [], []>} : vector<32x4xf32>, vector<4x128xf32>, vector<32x128xf32> -> vector<32x128xf32>
    %c2_62 = arith.constant 2 : index
    %c0_63 = arith.constant 0 : index
    %c0_64 = arith.constant 0 : index
    %83 = vector.load %arg4[%c2_62, %c0_63, %c0_64] : memref<4x32x1xf32, #tpu.memory_space<vmem>>, vector<1x32x1xf32>
    %84 = vector.shape_cast %83 : vector<1x32x1xf32> to vector<32x1xf32>
    %85 = vector.broadcast %84 : vector<32x1xf32> to vector<32x128xf32>
    %86 = vector.broadcast %1 : vector<1x128xf32> to vector<32x128xf32>
    %87 = arith.mulf %85, %86 : vector<32x128xf32>
    %88 = arith.addf %82, %87 : vector<32x128xf32>
    %c2_65 = arith.constant 2 : index
    %c0_66 = arith.constant 0 : index
    %c0_67 = arith.constant 0 : index
    %89 = vector.load %arg5[%c2_65, %c0_66, %c0_67] : memref<4x32x1xf32, #tpu.memory_space<vmem>>, vector<1x32x1xf32>
    %90 = vector.shape_cast %89 : vector<1x32x1xf32> to vector<32x1xf32>
    %91 = vector.broadcast %90 : vector<32x1xf32> to vector<32x128xf32>
    %92 = arith.addf %88, %91 : vector<32x128xf32>
    %cst_68 = arith.constant 0.000000e+00 : f32
    %93 = vector.broadcast %cst_68 : f32 to vector<32x128xf32>
    %94 = arith.maximumf %92, %93 : vector<32x128xf32>
    %c2_69 = arith.constant 2 : index
    %c0_70 = arith.constant 0 : index
    %c0_71 = arith.constant 0 : index
    %95 = vector.load %arg6[%c2_69, %c0_70, %c0_71] : memref<4x32x32xf32, #tpu.memory_space<vmem>>, vector<1x32x32xf32>
    %96 = vector.shape_cast %95 : vector<1x32x32xf32> to vector<32x32xf32>
    %cst_72 = arith.constant dense<0.000000e+00> : vector<32x128xf32>
    %97 = tpu.matmul %96, %94, %cst_72 {dimension_numbers = #tpu.dot_dimension_numbers<[1], [0], [0], [1], [0, 0, 1, 1], [], []>} : vector<32x32xf32>, vector<32x128xf32>, vector<32x128xf32> -> vector<32x128xf32>
    %c2_73 = arith.constant 2 : index
    %c0_74 = arith.constant 0 : index
    %c0_75 = arith.constant 0 : index
    %98 = vector.load %arg7[%c2_73, %c0_74, %c0_75] : memref<4x32x1xf32, #tpu.memory_space<vmem>>, vector<1x32x1xf32>
    %99 = vector.shape_cast %98 : vector<1x32x1xf32> to vector<32x1xf32>
    %100 = vector.broadcast %99 : vector<32x1xf32> to vector<32x128xf32>
    %101 = arith.addf %97, %100 : vector<32x128xf32>
    %cst_76 = arith.constant 0.000000e+00 : f32
    %102 = vector.broadcast %cst_76 : f32 to vector<32x128xf32>
    %103 = arith.maximumf %101, %102 : vector<32x128xf32>
    %c2_77 = arith.constant 2 : index
    %c0_78 = arith.constant 0 : index
    %c0_79 = arith.constant 0 : index
    %104 = vector.load %arg8[%c2_77, %c0_78, %c0_79] : memref<4x4x32xf32, #tpu.memory_space<vmem>>, vector<1x4x32xf32>
    %105 = vector.shape_cast %104 : vector<1x4x32xf32> to vector<4x32xf32>
    %cst_80 = arith.constant dense<0.000000e+00> : vector<4x128xf32>
    %106 = tpu.matmul %105, %103, %cst_80 {dimension_numbers = #tpu.dot_dimension_numbers<[1], [0], [0], [1], [0, 0, 1, 1], [], []>} : vector<4x32xf32>, vector<32x128xf32>, vector<4x128xf32> -> vector<4x128xf32>
    %c2_81 = arith.constant 2 : index
    %c0_82 = arith.constant 0 : index
    %c0_83 = arith.constant 0 : index
    %107 = vector.load %arg9[%c2_81, %c0_82, %c0_83] : memref<4x4x1xf32, #tpu.memory_space<vmem>>, vector<1x4x1xf32>
    %108 = vector.shape_cast %107 : vector<1x4x1xf32> to vector<4x1xf32>
    %109 = vector.broadcast %108 : vector<4x1xf32> to vector<4x128xf32>
    %110 = arith.addf %106, %109 : vector<4x128xf32>
    %c2_84 = arith.constant 2 : index
    %c0_85 = arith.constant 0 : index
    %c0_86 = arith.constant 0 : index
    %111 = vector.load %arg10[%c2_84, %c0_85, %c0_86] : memref<4x4x1xf32, #tpu.memory_space<vmem>>, vector<1x4x1xf32>
    %112 = vector.shape_cast %111 : vector<1x4x1xf32> to vector<4x1xf32>
    %113 = vector.broadcast %112 : vector<4x1xf32> to vector<4x128xf32>
    %114 = vector.broadcast %1 : vector<1x128xf32> to vector<4x128xf32>
    %115 = arith.mulf %113, %114 : vector<4x128xf32>
    %116 = math.tanh %115 : vector<4x128xf32>
    %117 = arith.mulf %116, %110 : vector<4x128xf32>
    %118 = arith.addf %79, %117 : vector<4x128xf32>
    %c3 = arith.constant 3 : index
    %c0_87 = arith.constant 0 : index
    %c0_88 = arith.constant 0 : index
    %119 = vector.load %arg3[%c3, %c0_87, %c0_88] : memref<4x32x4xf32, #tpu.memory_space<vmem>>, vector<1x32x4xf32>
    %120 = vector.shape_cast %119 : vector<1x32x4xf32> to vector<32x4xf32>
    %cst_89 = arith.constant dense<0.000000e+00> : vector<32x128xf32>
    %121 = tpu.matmul %120, %118, %cst_89 {dimension_numbers = #tpu.dot_dimension_numbers<[1], [0], [0], [1], [0, 0, 1, 1], [], []>} : vector<32x4xf32>, vector<4x128xf32>, vector<32x128xf32> -> vector<32x128xf32>
    %c3_90 = arith.constant 3 : index
    %c0_91 = arith.constant 0 : index
    %c0_92 = arith.constant 0 : index
    %122 = vector.load %arg4[%c3_90, %c0_91, %c0_92] : memref<4x32x1xf32, #tpu.memory_space<vmem>>, vector<1x32x1xf32>
    %123 = vector.shape_cast %122 : vector<1x32x1xf32> to vector<32x1xf32>
    %124 = vector.broadcast %123 : vector<32x1xf32> to vector<32x128xf32>
    %125 = vector.broadcast %1 : vector<1x128xf32> to vector<32x128xf32>
    %126 = arith.mulf %124, %125 : vector<32x128xf32>
    %127 = arith.addf %121, %126 : vector<32x128xf32>
    %c3_93 = arith.constant 3 : index
    %c0_94 = arith.constant 0 : index
    %c0_95 = arith.constant 0 : index
    %128 = vector.load %arg5[%c3_93, %c0_94, %c0_95] : memref<4x32x1xf32, #tpu.memory_space<vmem>>, vector<1x32x1xf32>
    %129 = vector.shape_cast %128 : vector<1x32x1xf32> to vector<32x1xf32>
    %130 = vector.broadcast %129 : vector<32x1xf32> to vector<32x128xf32>
    %131 = arith.addf %127, %130 : vector<32x128xf32>
    %cst_96 = arith.constant 0.000000e+00 : f32
    %132 = vector.broadcast %cst_96 : f32 to vector<32x128xf32>
    %133 = arith.maximumf %131, %132 : vector<32x128xf32>
    %c3_97 = arith.constant 3 : index
    %c0_98 = arith.constant 0 : index
    %c0_99 = arith.constant 0 : index
    %134 = vector.load %arg6[%c3_97, %c0_98, %c0_99] : memref<4x32x32xf32, #tpu.memory_space<vmem>>, vector<1x32x32xf32>
    %135 = vector.shape_cast %134 : vector<1x32x32xf32> to vector<32x32xf32>
    %cst_100 = arith.constant dense<0.000000e+00> : vector<32x128xf32>
    %136 = tpu.matmul %135, %133, %cst_100 {dimension_numbers = #tpu.dot_dimension_numbers<[1], [0], [0], [1], [0, 0, 1, 1], [], []>} : vector<32x32xf32>, vector<32x128xf32>, vector<32x128xf32> -> vector<32x128xf32>
    %c3_101 = arith.constant 3 : index
    %c0_102 = arith.constant 0 : index
    %c0_103 = arith.constant 0 : index
    %137 = vector.load %arg7[%c3_101, %c0_102, %c0_103] : memref<4x32x1xf32, #tpu.memory_space<vmem>>, vector<1x32x1xf32>
    %138 = vector.shape_cast %137 : vector<1x32x1xf32> to vector<32x1xf32>
    %139 = vector.broadcast %138 : vector<32x1xf32> to vector<32x128xf32>
    %140 = arith.addf %136, %139 : vector<32x128xf32>
    %cst_104 = arith.constant 0.000000e+00 : f32
    %141 = vector.broadcast %cst_104 : f32 to vector<32x128xf32>
    %142 = arith.maximumf %140, %141 : vector<32x128xf32>
    %c3_105 = arith.constant 3 : index
    %c0_106 = arith.constant 0 : index
    %c0_107 = arith.constant 0 : index
    %143 = vector.load %arg8[%c3_105, %c0_106, %c0_107] : memref<4x4x32xf32, #tpu.memory_space<vmem>>, vector<1x4x32xf32>
    %144 = vector.shape_cast %143 : vector<1x4x32xf32> to vector<4x32xf32>
    %cst_108 = arith.constant dense<0.000000e+00> : vector<4x128xf32>
    %145 = tpu.matmul %144, %142, %cst_108 {dimension_numbers = #tpu.dot_dimension_numbers<[1], [0], [0], [1], [0, 0, 1, 1], [], []>} : vector<4x32xf32>, vector<32x128xf32>, vector<4x128xf32> -> vector<4x128xf32>
    %c3_109 = arith.constant 3 : index
    %c0_110 = arith.constant 0 : index
    %c0_111 = arith.constant 0 : index
    %146 = vector.load %arg9[%c3_109, %c0_110, %c0_111] : memref<4x4x1xf32, #tpu.memory_space<vmem>>, vector<1x4x1xf32>
    %147 = vector.shape_cast %146 : vector<1x4x1xf32> to vector<4x1xf32>
    %148 = vector.broadcast %147 : vector<4x1xf32> to vector<4x128xf32>
    %149 = arith.addf %145, %148 : vector<4x128xf32>
    %c3_112 = arith.constant 3 : index
    %c0_113 = arith.constant 0 : index
    %c0_114 = arith.constant 0 : index
    %150 = vector.load %arg10[%c3_112, %c0_113, %c0_114] : memref<4x4x1xf32, #tpu.memory_space<vmem>>, vector<1x4x1xf32>
    %151 = vector.shape_cast %150 : vector<1x4x1xf32> to vector<4x1xf32>
    %152 = vector.broadcast %151 : vector<4x1xf32> to vector<4x128xf32>
    %153 = vector.broadcast %1 : vector<1x128xf32> to vector<4x128xf32>
    %154 = arith.mulf %152, %153 : vector<4x128xf32>
    %155 = math.tanh %154 : vector<4x128xf32>
    %156 = arith.mulf %155, %149 : vector<4x128xf32>
    %157 = arith.addf %118, %156 : vector<4x128xf32>
    %c0_115 = arith.constant 0 : index
    %c0_116 = arith.constant 0 : index
    %158 = vector.load %arg11[%c0_115, %c0_116] : memref<4x128xf32, #tpu.memory_space<vmem>>, vector<4x128xf32>
    tpu.vector_store %arg11[%c0_115, %c0_116], %157 {strides = array<i32>} : memref<4x128xf32, #tpu.memory_space<vmem>>, vector<4x128xf32>,
    return
  }
  func.func @transform_0(%arg0: i32) -> (i32, i32) {
    %c0_i32 = arith.constant 0 : i32
    %c0_i32_0 = arith.constant 0 : i32
    return %c0_i32, %arg0 : i32, i32
  }
  func.func @transform_1(%arg0: i32) -> (i32, i32) {
    %c0_i32 = arith.constant 0 : i32
    %c0_i32_0 = arith.constant 0 : i32
    return %c0_i32, %arg0 : i32, i32
  }
  func.func @transform_2(%arg0: i32) -> (i32, i32, i32) {
    %c0_i32 = arith.constant 0 : i32
    %c0_i32_0 = arith.constant 0 : i32
    %c0_i32_1 = arith.constant 0 : i32
    %c0_i32_2 = arith.constant 0 : i32
    return %c0_i32, %c0_i32_0, %c0_i32_1 : i32, i32, i32
  }
  func.func @transform_3(%arg0: i32) -> (i32, i32, i32) {
    %c0_i32 = arith.constant 0 : i32
    %c0_i32_0 = arith.constant 0 : i32
    %c0_i32_1 = arith.constant 0 : i32
    %c0_i32_2 = arith.constant 0 : i32
    return %c0_i32, %c0_i32_0, %c0_i32_1 : i32, i32, i32
  }
  func.func @transform_4(%arg0: i32) -> (i32, i32, i32) {
    %c0_i32 = arith.constant 0 : i32
    %c0_i32_0 = arith.constant 0 : i32
    %c0_i32_1 = arith.constant 0 : i32
    %c0_i32_2 = arith.constant 0 : i32
    return %c0_i32, %c0_i32_0, %c0_i32_1 : i32, i32, i32
  }
  func.func @transform_5(%arg0: i32) -> (i32, i32, i32) {
    %c0_i32 = arith.constant 0 : i32
    %c0_i32_0 = arith.constant 0 : i32
    %c0_i32_1 = arith.constant 0 : i32
    %c0_i32_2 = arith.constant 0 : i32
    return %c0_i32, %c0_i32_0, %c0_i32_1 : i32, i32, i32
  }
  func.func @transform_6(%arg0: i32) -> (i32, i32, i32) {
    %c0_i32 = arith.constant 0 : i32
    %c0_i32_0 = arith.constant 0 : i32
    %c0_i32_1 = arith.constant 0 : i32
    %c0_i32_2 = arith.constant 0 : i32
    return %c0_i32, %c0_i32_0, %c0_i32_1 : i32, i32, i32
  }
  func.func @transform_7(%arg0: i32) -> (i32, i32, i32) {
    %c0_i32 = arith.constant 0 : i32
    %c0_i32_0 = arith.constant 0 : i32
    %c0_i32_1 = arith.constant 0 : i32
    %c0_i32_2 = arith.constant 0 : i32
    return %c0_i32, %c0_i32_0, %c0_i32_1 : i32, i32, i32
  }
  func.func @transform_8(%arg0: i32) -> (i32, i32, i32) {
    %c0_i32 = arith.constant 0 : i32
    %c0_i32_0 = arith.constant 0 : i32
    %c0_i32_1 = arith.constant 0 : i32
    %c0_i32_2 = arith.constant 0 : i32
    return %c0_i32, %c0_i32_0, %c0_i32_1 : i32, i32, i32
  }
  func.func @transform_9(%arg0: i32) -> (i32, i32, i32) {
    %c0_i32 = arith.constant 0 : i32
    %c0_i32_0 = arith.constant 0 : i32
    %c0_i32_1 = arith.constant 0 : i32
    %c0_i32_2 = arith.constant 0 : i32
    return %c0_i32, %c0_i32_0, %c0_i32_1 : i32, i32, i32
  }
  func.func @transform_10(%arg0: i32) -> (i32, i32) {
    %c0_i32 = arith.constant 0 : i32
    %c0_i32_0 = arith.constant 0 : i32
    return %c0_i32, %arg0 : i32, i32
  }
}

</mosaic_0001>

<bundles_post_ra>
// kernel: _lambda_.1
= control target key start
LH: loop header
LB: loop body
LE: loop exit
PB: predicated region body
PF: predicated region fallthrough
CT: control target
= control target key end

     0   :  { %15 = vsyncpa [#allocation3], 0  ;;  %s2427_s0 = inlined_call_operand.vmem [shape: f32[4,128], index: 0, kind: input, shape index: {}]   ;;  %s2428_s1 = inlined_call_operand.vmem [shape: f32[1,128], index: 1, kind: input, shape index: {}]   ;;  %s2429_s2 = inlined_call_operand.hbm [shape: f32[4,32,4], index: 2, kind: input, shape index: {}]   ;;  %s2430_s3 = inlined_call_operand.hbm [shape: f32[4,32,1], index: 3, kind: input, shape index: {}]   ;;  %s2431_s4 = inlined_call_operand.hbm [shape: f32[4,32,1], index: 4, kind: input, shape index: {}]   ;;  %s2432_s5 = inlined_call_operand.hbm [shape: f32[4,32,32], index: 5, kind: input, shape index: {}]   ;;  %s2433_s6 = inlined_call_operand.hbm [shape: f32[4,32,1], index: 6, kind: input, shape index: {}]   ;;  %s2434_s7 = inlined_call_operand.vmem [shape: f32[4,4,32], index: 7, kind: input, shape index: {}]   ;;  %s2435_s8 = inlined_call_operand.vmem [shape: f32[4,4,1], index: 8, kind: input, shape index: {}]   ;;  %s2436_s9 = inlined_call_operand.vmem [shape: f32[4,4,1], index: 9, kind: input, shape index: {}]   ;;  %s2437_s10 = inlined_call_operand.vmem [shape: f32[4,128], index: 10, kind: output, shape index: {}]  }
   0x1   :  { %16 = vsyncpa [#allocation5], 0 }
   0x2   :  { %17 = vsyncpa [#allocation8], 0  ;;  %s2125_s13 = smov [#allocation4]   ;;  %s2126_s15 = smov [#allocation7]  }
   0x3   :  { %s39_s14 = sshll.u32 %s2125_s13, 4  ;;  %s63_s16 = sshll.u32 %s2126_s15, 4  ;;  %s40_s14 = int_to_ptr.vmem [resolvable:$true] %s39_s14  ;;  %s2191_s16 = int_to_ptr.vmem [resolvable:$true] %s63_s16 }
   0x4   :  { %s2009_s19 = scalar_lea.hbm %s2430_s3, 2048 }
   0x5   :  { %p2010_p0 = scmp.ne.s32.totalorder %s2430_s3, %s2009_s19  ;;  %p2013_p1 = scmp.lt.u32.totalorder %s2009_s19, %s2430_s3 }
   0x7   :  { %p2015_p2 = pnand %p2013_p1, %p2010_p0 }
   0x9   :  { %2018 = shalt.err (!%p2015_p2)
}
   0xa   :  { %s2019_s24 = scalar_lea.vmem %s40_s14, 2048  ;;  %p2024_p4 = scmp.lt.s32.totalorder %s40_s14, %s40_s14 }
   0xb   :  { %p2020_p3 = scmp.ne.s32.totalorder %s40_s14, %s2019_s24  ;;  %p2025_p5 = scmp.lt.s32.totalorder %s2019_s24, %s2019_s24 }
   0xd   :  { %p2026_p6 = por %p2025_p5, %p2024_p4 }
   0xf   :  { %p2027_p7 = pnand %p2026_p6, %p2020_p3 }
  0x11   :  { %2030 = shalt.err (!%p2027_p7)
}
  0x12   :  { %s2127_s25 = smov 128   ;;  %s2128_s26 = smov 8  }
  0x13   :  { %45 = dma.hbm_to_vmem [thread:$0]  %s2430_s3, 2048, %s40_s14, [#allocation5], %s2127_s25, %s2127_s25, %s2128_s26  }
  0x14   :  { %s2031_s11 = scalar_lea.hbm %s2432_s5, 2048 }
  0x15   :  { %p2032_p8 = scmp.ne.s32.totalorder %s2432_s5, %s2031_s11  ;;  %p2035_p9 = scmp.lt.u32.totalorder %s2031_s11, %s2432_s5 }
  0x17   :  { %p2037_p10 = pnand %p2035_p9, %p2032_p8 }
  0x19   :  { %2040 = shalt.err (!%p2037_p10)
}
  0x1a   :  { %s2041_s18 = scalar_lea.vmem %s2191_s16, 2048  ;;  %p2046_p12 = scmp.lt.s32.totalorder %s2191_s16, %s2191_s16 }
  0x1b   :  { %p2042_p11 = scmp.ne.s32.totalorder %s2191_s16, %s2041_s18  ;;  %p2047_p13 = scmp.lt.s32.totalorder %s2041_s18, %s2041_s18 }
  0x1d   :  { %p2048_p0 = por %p2047_p13, %p2046_p12 }
  0x1f   :  { %p2049_p1 = pnand %p2048_p0, %p2042_p11 }
  0x21   :  { %2052 = shalt.err (!%p2049_p1)
}
  0x22   :  { %69 = dma.hbm_to_vmem [thread:$0]  %s2432_s5, 2048, %s2191_s16, [#allocation8], %s2127_s25, %s2127_s25, %s2128_s26  }
  0x23   :  { %s2129_s19 = smov [#allocation2]   ;;  %s2130_s21 = smov [#allocation6]  }
  0x24   :  { %s27_s20 = sshll.u32 %s2129_s19, 4  ;;  %s51_s22 = sshll.u32 %s2130_s21, 4  ;;  %s28_s20 = int_to_ptr.vmem [resolvable:$true] %s27_s20  ;;  %s2228_s22 = int_to_ptr.vmem [resolvable:$true] %s51_s22 }
  0x25   :  { %s2053_s27 = scalar_lea.hbm %s2429_s2, 2048 }
  0x26   :  { %p2054_p2 = scmp.ne.s32.totalorder %s2429_s2, %s2053_s27  ;;  %p2057_p3 = scmp.lt.u32.totalorder %s2053_s27, %s2429_s2 }
  0x28   :  { %p2059_p4 = pnand %p2057_p3, %p2054_p2 }
  0x2a   :  { %2062 = shalt.err (!%p2059_p4)
}
  0x2b   :  { %s2063_s5 = scalar_lea.vmem %s28_s20, 2048  ;;  %p2068_p6 = scmp.lt.s32.totalorder %s28_s20, %s28_s20 }
  0x2c   :  { %p2064_p5 = scmp.ne.s32.totalorder %s28_s20, %s2063_s5  ;;  %p2069_p7 = scmp.lt.s32.totalorder %s2063_s5, %s2063_s5 }
  0x2e   :  { %p2070_p8 = por %p2069_p7, %p2068_p6 }
  0x30   :  { %p2071_p9 = pnand %p2070_p8, %p2064_p5 }
  0x32   :  { %2074 = shalt.err (!%p2071_p9)
}
  0x33   :  { %33 = dma.hbm_to_vmem [thread:$0]  %s2429_s2, 2048, %s28_s20, [#allocation3], %s2127_s25, %s2127_s25, %s2128_s26  }
  0x34   :  { %s2075_s17 = scalar_lea.hbm %s2431_s4, 2048 }
  0x35   :  { %p2076_p10 = scmp.ne.s32.totalorder %s2431_s4, %s2075_s17  ;;  %p2079_p11 = scmp.lt.u32.totalorder %s2075_s17, %s2431_s4 }
  0x37   :  { %p2081_p12 = pnand %p2079_p11, %p2076_p10 }
  0x39   :  { %2084 = shalt.err (!%p2081_p12)
}
  0x3a   :  { %s2085_s21 = scalar_lea.vmem %s2228_s22, 2048  ;;  %p2090_p0 = scmp.lt.s32.totalorder %s2228_s22, %s2228_s22 }
  0x3b   :  { %p2086_p13 = scmp.ne.s32.totalorder %s2228_s22, %s2085_s21  ;;  %p2091_p1 = scmp.lt.s32.totalorder %s2085_s21, %s2085_s21 }
  0x3d   :  { %p2092_p2 = por %p2091_p1, %p2090_p0 }
  0x3f   :  { %p2093_p3 = pnand %p2092_p2, %p2086_p13 }
  0x41   :  { %2096 = shalt.err (!%p2093_p3)
}
  0x42   :  { %57 = dma.hbm_to_vmem [thread:$0]  %s2431_s4, 2048, %s2228_s22, [#allocation5], %s2127_s25, %s2127_s25, %s2128_s26  }
  0x43   :  { %s2131_s23 = smov [#allocation9]   ;;  %s2097_s29 = scalar_lea.hbm %s2433_s6, 2048 }
  0x44   :  { %s75_s24 = sshll.u32 %s2131_s23, 4  ;;  %p2098_p4 = scmp.ne.s32.totalorder %s2433_s6, %s2097_s29  ;;  %s76_s24 = int_to_ptr.vmem [resolvable:$true] %s75_s24 }
  0x45   :  { %p2101_p5 = scmp.lt.u32.totalorder %s2097_s29, %s2433_s6 }
  0x47   :  { %p2103_p6 = pnand %p2101_p5, %p2098_p4 }
  0x49   :  { %2106 = shalt.err (!%p2103_p6)
}
  0x4a   :  { %s2107_s12 = scalar_lea.vmem %s76_s24, 2048  ;;  %p2112_p8 = scmp.lt.s32.totalorder %s76_s24, %s76_s24 }
  0x4b   :  { %p2108_p7 = scmp.ne.s32.totalorder %s76_s24, %s2107_s12  ;;  %p2113_p9 = scmp.lt.s32.totalorder %s2107_s12, %s2107_s12 }
  0x4d   :  { %p2114_p10 = por %p2113_p9, %p2112_p8 }
  0x4f   :  { %p2115_p11 = pnand %p2114_p10, %p2108_p7 }
  0x51   :  { %2118 = shalt.err (!%p2115_p11)
}
  0x52   :  { %81 = dma.hbm_to_vmem [thread:$0]  %s2433_s6, 2048, %s76_s24, [#allocation8], %s2127_s25, %s2127_s25, %s2128_s26  }
  0x53   :  { %2119 = dma.done.wait [#allocation3], 2048  }
  0x54   :  { %2120 = vsyncadd [#allocation3], 4294965248 }
  0x55   :  { %2121 = dma.done.wait [#allocation5], 4096  }
  0x56   :  { %2122 = vsyncadd [#allocation5], 4294963200 }
  0x57   :  { %2123 = dma.done.wait [#allocation8], 4096  }
  0x58   :  { %2124 = vsyncadd [#allocation8], 4294963200  ;;  %v2132_v0 = vmov 0   ;;  %vm156_vm0 = vcmask 1043456   ;;  %vm143_vm1 = vcmask 31744   ;;  %v111_v1 = vld [vmem:[#allocation4 + $0x10] sm:$0xff] }
  0x59   :  { %2000 = vset.pattern.permute.xlu1 %v2132_v0  ;;  %1999 = vset.pattern.permute.xlu0 %v2132_v0  ;;  %v109_v2 = vld [vmem:[#allocation4] sm:$0xff]  ;;  %v106_v5 = vld [vmem:[#allocation2 + $0x8] sm:$0xff]  ;;  %v112_v6 = vld [vmem:[#allocation4 + $0x18] sm:$0xff]  ;;  %vm305_vm2 = vcmask 261120   ;;  %vm2134_vm3 = vmmov 0  }
  0x5a   :  { %v2283_v3 = vld [vmem:[%s2427_s0] sm:$0xf]  ;;  %125 = vperm.xlu1 %2000, %v111_v1   ;;  %115 = vperm.xlu0 %1999, %v109_v2   ;;  %v110_v7 = vld [vmem:[#allocation4 + $0x8] sm:$0xff]  ;;  %v107_v8 = vld [vmem:[#allocation2 + $0x10] sm:$0xff] }
  0x5b   :  { %v105_v4 = vld [vmem:[#allocation2] sm:$0xff]  ;;  %1800 = vmatprep.subr.msk.mxu0 %vm156_vm0, %v2283_v3  ;;  %v108_v9 = vld [vmem:[#allocation2 + $0x18] sm:$0xff]  ;;  %v246_v10 = vld [vmem:[#allocation6 + $0x8] sm:$0xff] }
  0x5c   :  { %1802 = vmatprep.mubr.msk.f32.mxu0 %vm143_vm1, %v105_v4  ;;  %1801 = vmatpush3.msk.msra.mxu0 %vm156_vm0, %v2283_v3  ;;  %v245_v11 = vld [vmem:[#allocation6] sm:$0xff]  ;;  %v248_v12 = vld [vmem:[#allocation6 + $0x18] sm:$0xff]  ;;  %v247_v13 = vld [vmem:[#allocation6 + $0x10] sm:$0xff] }
  0x5d   :  { %1803 = vmatmul.mubr.msk.f32.vlgmr.msra.gmra.mrb[0].mxu0 %vm143_vm1, %v106_v5  ;;  %v282_v14 = vld [vmem:[#allocation9 + $0x8] sm:$0xff]  ;;  %v281_v15 = vld [vmem:[#allocation9] sm:$0xff]  ;;  %v284_v16 = vld [vmem:[#allocation9 + $0x18] sm:$0xff] }
  0x5e   :  { %130 = vperm.xlu1 %2000, %v112_v6   ;;  %120 = vperm.xlu0 %1999, %v110_v7   ;;  %v283_v17 = vld [vmem:[#allocation9 + $0x10] sm:$0xff]  ;;  %v408_v18 = vld [vmem:[%s2435_s8] sm:$0xf]  ;;  %v504_v20 = vld [vmem:[#allocation4 + $0x28] sm:$0xff] }
  0x5f   :  { %1805 = vmatprep.mubr.msk.f32.mxu0 %vm143_vm1, %v107_v8  ;;  %v487_v19 = vld [vmem:[%s2436_s9] sm:$0xf]  ;;  %v506_v22 = vld [vmem:[#allocation4 + $0x38] sm:$0xff]  ;;  %v505_v23 = vld [vmem:[#allocation4 + $0x30] sm:$0xff] }
  0x60   :  { %v503_v21 = vld [vmem:[#allocation4 + $0x20] sm:$0xff]  ;;  %v633_v24 = vld [vmem:[#allocation6 + $0x28] sm:$0xff]  ;;  %v635_v26 = vld [vmem:[#allocation6 + $0x38] sm:$0xff] }
  0x61   :  { %1806 = vmatmul.mubr.msk.f32.gmra.mrb[2].mxu0 %vm143_vm1, %v108_v9  ;;  %v632_v25 = vld [vmem:[#allocation6 + $0x20] sm:$0xff]  ;;  %v634_v27 = vld [vmem:[#allocation6 + $0x30] sm:$0xff]  ;;  %v671_v28 = vld [vmem:[#allocation9 + $0x28] sm:$0xff] }
  0x62   :  { %256 = vperm.xlu1 %2000, %v246_v10   ;;  %251 = vperm.xlu0 %1999, %v245_v11   ;;  %v670_v29 = vld [vmem:[#allocation9 + $0x20] sm:$0xff]  ;;  %v673_v30 = vld [vmem:[#allocation9 + $0x38] sm:$0xff]  ;;  %v672_v31 = vld [vmem:[#allocation9 + $0x30] sm:$0xff] }
  0x63   :  { %v1699_v32 = vld [vmem:[%s2435_s8 + $0x4] sm:$0xf]  ;;  %v895_v34 = vld [vmem:[#allocation4 + $0x48] sm:$0xff]  ;;  %v897_v36 = vld [vmem:[#allocation4 + $0x58] sm:$0xff] }
  0x64   :  { %v1701_v33 = vld [vmem:[%s2436_s9 + $0x4] sm:$0xf]  ;;  %v896_v37 = vld [vmem:[#allocation4 + $0x50] sm:$0xff]  ;;  %v1024_v38 = vld [vmem:[#allocation6 + $0x48] sm:$0xff] }
  0x65   :  { %v894_v35 = vld [vmem:[#allocation4 + $0x40] sm:$0xff]  ;;  %v1026_v40 = vld [vmem:[#allocation6 + $0x58] sm:$0xff]  ;;  %v1025_v41 = vld [vmem:[#allocation6 + $0x50] sm:$0xff] }
  0x66   :  { %266 = vperm.xlu1 %2000, %v248_v12   ;;  %261 = vperm.xlu0 %1999, %v247_v13   ;;  %v1023_v39 = vld [vmem:[#allocation6 + $0x40] sm:$0xff]  ;;  %v1062_v42 = vld [vmem:[#allocation9 + $0x48] sm:$0xff]  ;;  %v1064_v44 = vld [vmem:[#allocation9 + $0x58] sm:$0xff] }
  0x67   :  { %v1061_v43 = vld [vmem:[#allocation9 + $0x40] sm:$0xff]  ;;  %v1063_v45 = vld [vmem:[#allocation9 + $0x50] sm:$0xff]  ;;  %v1712_v46 = vld [vmem:[%s2435_s8 + $0x8] sm:$0xf] }
  0x68   :  { %v1714_v47 = vld [vmem:[%s2436_s9 + $0x8] sm:$0xf]  ;;  %v1285_v49 = vld [vmem:[#allocation4 + $0x60] sm:$0xff]  ;;  %v1288_v50 = vld [vmem:[#allocation4 + $0x78] sm:$0xff] }
  0x69   :  { %v1286_v48 = vld [vmem:[#allocation4 + $0x68] sm:$0xff]  ;;  %v1287_v51 = vld [vmem:[#allocation4 + $0x70] sm:$0xff]  ;;  %v1414_v53 = vld [vmem:[#allocation6 + $0x60] sm:$0xff] }
  0x6a   :  { %292 = vperm.xlu1 %2000, %v282_v14   ;;  %287 = vperm.xlu0 %1999, %v281_v15   ;;  %v1415_v52 = vld [vmem:[#allocation6 + $0x68] sm:$0xff]  ;;  %v1417_v54 = vld [vmem:[#allocation6 + $0x78] sm:$0xff]  ;;  %v1416_v55 = vld [vmem:[#allocation6 + $0x70] sm:$0xff] }
  0x6b   :  { %v1453_v56 = vld [vmem:[#allocation9 + $0x68] sm:$0xff]  ;;  %v1452_v57 = vld [vmem:[#allocation9 + $0x60] sm:$0xff]  ;;  %v1455_v58 = vld [vmem:[#allocation9 + $0x78] sm:$0xff] }
  0x6c   :  { %v1454_v59 = vld [vmem:[#allocation9 + $0x70] sm:$0xff]  ;;  %v277_v60 = vld [vmem:[#allocation7] sm:$0xff]  ;;  %v1725_v61 = vld [vmem:[%s2435_s8 + $0xc] sm:$0xf] }
  0x6d   :  { %1816 = vmatprep.mubr.msk.f32.mxu1 %vm305_vm2, %v277_v60  ;;  %v1727_v62 = vld [vmem:[%s2436_s9 + $0xc] sm:$0xf]  ;;  %v2321_v4 = vld [vmem:[%s2428_s1] ss:$0 sm:$0xff] }
  0x6e   :  { %302 = vperm.xlu1 %2000, %v284_v16   ;;  %297 = vperm.xlu0 %1999, %v283_v17  }
  0x72   :  { %411 = vperm.xlu1 %2000, %v408_v18   ;;  %490 = vperm.xlu0 %1999, %v487_v19  }
  0x76   :  { %514 = vperm.xlu1 %2000, %v504_v20   ;;  %509 = vperm.xlu0 %1999, %v503_v21  }
  0x7a   :  { %524 = vperm.xlu1 %2000, %v506_v22   ;;  %519 = vperm.xlu0 %1999, %v505_v23  }
  0x7e   :  { %643 = vperm.xlu1 %2000, %v633_v24   ;;  %638 = vperm.xlu0 %1999, %v632_v25  }
  0x82   :  { %653 = vperm.xlu1 %2000, %v635_v26   ;;  %648 = vperm.xlu0 %1999, %v634_v27  }
  0x86   :  { %681 = vperm.xlu1 %2000, %v671_v28   ;;  %676 = vperm.xlu0 %1999, %v670_v29  }
  0x8a   :  { %691 = vperm.xlu1 %2000, %v673_v30   ;;  %686 = vperm.xlu0 %1999, %v672_v31   ;;  %v278_v31 = vld [vmem:[#allocation7 + $0x8] sm:$0xff] }
  0x8e   :  { %801 = vperm.xlu1 %2000, %v1699_v32   ;;  %881 = vperm.xlu0 %1999, %v1701_v33   ;;  %v279_v32 = vld [vmem:[#allocation7 + $0x10] sm:$0xff]  ;;  %v280_v33 = vld [vmem:[#allocation7 + $0x18] sm:$0xff] }
  0x92   :  { %905 = vperm.xlu1 %2000, %v895_v34   ;;  %900 = vperm.xlu0 %1999, %v894_v35   ;;  %v2133_v34 = vmov 0.0|0.0   ;;  %v2135_v35 = vmov 0.0  }
  0x93   :  { %1940 = vmatprep.subr.bf16.mxu0 %v2133_v34  ;;  %1830 = vmatprep.mubr.msk.f32.mxu0 %vm2134_vm3, %v2135_v35 }
  0x96   :  { %915 = vperm.xlu1 %2000, %v897_v36   ;;  %910 = vperm.xlu0 %1999, %v896_v37  }
  0x9a   :  { %1034 = vperm.xlu1 %2000, %v1024_v38   ;;  %1029 = vperm.xlu0 %1999, %v1023_v39  }
  0x9e   :  { %1044 = vperm.xlu1 %2000, %v1026_v40   ;;  %1039 = vperm.xlu0 %1999, %v1025_v41  }
  0xa2   :  { %1072 = vperm.xlu1 %2000, %v1062_v42   ;;  %1067 = vperm.xlu0 %1999, %v1061_v43  }
  0xa6   :  { %1082 = vperm.xlu1 %2000, %v1064_v44   ;;  %1077 = vperm.xlu0 %1999, %v1063_v45  }
  0xaa   :  { %1192 = vperm.xlu1 %2000, %v1712_v46   ;;  %1272 = vperm.xlu0 %1999, %v1714_v47  }
  0xae   :  { %1296 = vperm.xlu1 %2000, %v1286_v48   ;;  %1291 = vperm.xlu0 %1999, %v1285_v49  }
  0xb2   :  { %1306 = vperm.xlu1 %2000, %v1288_v50   ;;  %1301 = vperm.xlu0 %1999, %v1287_v51  }
  0xb6   :  { %1425 = vperm.xlu1 %2000, %v1415_v52   ;;  %1420 = vperm.xlu0 %1999, %v1414_v53  }
  0xba   :  { %1435 = vperm.xlu1 %2000, %v1417_v54   ;;  %1430 = vperm.xlu0 %1999, %v1416_v55   ;;  %v407_v54 = vld [vmem:[%s2434_s7] sm:$0xf] }
  0xbb   :  { %v498_v55 = vld [vmem:[#allocation2 + $0x20] sm:$0xff] }
  0xbe   :  { %1463 = vperm.xlu1 %2000, %v1453_v56   ;;  %1458 = vperm.xlu0 %1999, %v1452_v57  }
  0xc2   :  { %1473 = vperm.xlu1 %2000, %v1455_v58   ;;  %1468 = vperm.xlu0 %1999, %v1454_v59  }
  0xc6   :  { %1583 = vperm.xlu1 %2000, %v1725_v61   ;;  %1663 = vperm.xlu0 %1999, %v1727_v62  }
  0xd9   :  { %v126_v63 = vpop.permute.xlu1 %125  ;;  %v116_v0 = vpop.permute.xlu0 %115 }
  0xda   :  { %v139_v6 = vmul.f32 %v2321_v4, %v116_v0  ;;  %v141_v15 = vmul.f32 %v2321_v4, %v126_v63 }
  0xdd   :  { %v131_v1 = vpop.permute.xlu1 %130  ;;  %v121_v2 = vpop.permute.xlu0 %120 }
  0xde   :  { %v140_v5 = vmul.f32 %v2321_v4, %v121_v2  ;;  %v142_v13 = vmul.f32 %v2321_v4, %v131_v1  ;;  %v499_v1 = vld [vmem:[#allocation2 + $0x28] sm:$0xff]  ;;  %v500_v2 = vld [vmem:[#allocation2 + $0x30] sm:$0xff] }
  0xe1   :  { %v257_v7 = vpop.permute.xlu1 %256  ;;  %v252_v9 = vpop.permute.xlu0 %251 }
  0xe5   :  { %v267_v21 = vpop.permute.xlu1 %266  ;;  %v262_v24 = vpop.permute.xlu0 %261 }
  0xe9   :  { %v293_v36 = vpop.permute.xlu1 %292  ;;  %v288_v37 = vpop.permute.xlu0 %287 }
  0xed   :  { %v303_v43 = vpop.permute.xlu1 %302  ;;  %v298_v46 = vpop.permute.xlu0 %297 }
  0xf1   :  { %v491_v56 = vpop.permute.xlu0 %490  ;;  %v412_v58 = vpop.permute.xlu1 %411 }
  0xf2   :  { %v493_v57 = vmul.f32 %v2321_v4, %v491_v56 }
  0xf4   :  { %2001 = vtanh.f32 %v493_v57 }
  0xfe   :  { %v2002_v62 = vpop.eup %2001 }
 0x130   :  { %v1804_v8 = vpop.f32.mrb[0].mxu0 }
 0x131   :  { %v232_v10 = vadd.f32 %v1804_v8, %v140_v5  ;;  %v226_v11 = vpop.f32.mrb[1].mxu0  ;;  %v501_v5 = vld [vmem:[#allocation2 + $0x38] sm:$0xff] }
 0x132   :  { %v227_v12 = vadd.f32 %v226_v11, %v139_v6  ;;  %v515_v6 = vpop.permute.xlu1 %514 }
 0x133   :  { %v270_v14 = vadd.f32 %v257_v7, %v232_v10  ;;  %v510_v7 = vpop.permute.xlu0 %509  ;;  %v528_v10 = vmul.f32 %v2321_v4, %v515_v6 }
 0x134   :  { %v269_v16 = vadd.f32 %v252_v9, %v227_v12  ;;  %v1807_v17 = vpop.f32.mrb[2].mxu0  ;;  %v527_v11 = vmul.f32 %v2321_v4, %v510_v7 }
 0x135   :  { %v274_v18 = vmax.f32 %v270_v14, 0.0  ;;  %v242_v19 = vadd.f32 %v1807_v17, %v142_v13  ;;  %v236_v20 = vpop.f32.mrb[3].mxu0 }
 0x136   :  { %v273_v22 = vmax.f32 %v269_v16, 0.0  ;;  %v237_v23 = vadd.f32 %v236_v20, %v141_v15  ;;  %v525_v8 = vpop.permute.xlu1 %524 }
 0x137   :  { %v272_v25 = vadd.f32 %v267_v21, %v242_v19  ;;  %v520_v9 = vpop.permute.xlu0 %519 }
 0x138   :  { %v271_v26 = vadd.f32 %v262_v24, %v237_v23  ;;  %v1932_v27 = vpack.c.bf16 %v274_v18, %v273_v22  ;;  %v530_v18 = vmul.f32 %v2321_v4, %v525_v8  ;;  %v529_v20 = vmul.f32 %v2321_v4, %v520_v9  ;;  %v890_v8 = vld [vmem:[#allocation2 + $0x48] sm:$0xff]  ;;  %v891_v9 = vld [vmem:[#allocation2 + $0x50] sm:$0xff] }
 0x139   :  { %v276_v28 = vmax.f32 %v272_v25, 0.0 }
 0x13a   :  { %v275_v29 = vmax.f32 %v271_v26, 0.0  ;;  %1933 = vmatprep.subr.bf16.mxu1 %v1932_v27  ;;  %v644_v12 = vpop.permute.xlu1 %643 }
 0x13b   :  { %1935 = vmatpush3.bf16.msra.mxu1 %v1932_v27  ;;  %v639_v14 = vpop.permute.xlu0 %638 }
 0x13c   :  { %v1936_v30 = vpack.c.bf16 %v276_v28, %v275_v29 }
 0x13e   :  { %1937 = vmatprep.subr.bf16.mxu1 %v1936_v30  ;;  %v654_v26 = vpop.permute.xlu1 %653 }
 0x13f   :  { %1939 = vmatpush3.bf16.msra.mxu1 %v1936_v30  ;;  %v649_v29 = vpop.permute.xlu0 %648 }
 0x142   :  { %1817 = vmatmul.mubr.msk.f32.vlgmr.msra.gmra.mrb[0].mxu1 %vm305_vm2, %v278_v31 }
 0x143   :  { %1819 = vmatprep.mubr.msk.f32.mxu1 %vm305_vm2, %v279_v32 }
 0x146   :  { %1820 = vmatmul.mubr.msk.f32.gmra.mrb[2].mxu1 %vm305_vm2, %v280_v33 }
 0x215   :  { %v1818_v38 = vpop.f32.mrb[0].mxu1 }
 0x216   :  { %v390_v39 = vadd.f32 %v1818_v38, %v293_v36  ;;  %v384_v40 = vpop.f32.mrb[1].mxu1  ;;  %v666_v38 = vld [vmem:[#allocation7 + $0x28] sm:$0xff] }
 0x217   :  { %v385_v41 = vadd.f32 %v384_v40, %v288_v37  ;;  %v668_v40 = vld [vmem:[#allocation7 + $0x38] sm:$0xff] }
 0x218   :  { %v404_v42 = vmax.f32 %v390_v39, 0.0  ;;  %v667_v39 = vld [vmem:[#allocation7 + $0x30] sm:$0xff] }
 0x219   :  { %v403_v44 = vmax.f32 %v385_v41, 0.0  ;;  %v1821_v45 = vpop.f32.mrb[2].mxu1  ;;  %v682_v41 = vpop.permute.xlu1 %681 }
 0x21a   :  { %v400_v47 = vadd.f32 %v1821_v45, %v303_v43  ;;  %v394_v48 = vpop.f32.mrb[3].mxu1 }
 0x21b   :  { %v1941_v49 = vpack.c.bf16 %v404_v42, %v403_v44  ;;  %v395_v50 = vadd.f32 %v394_v48, %v298_v46  ;;  %v677_v42 = vpop.permute.xlu0 %676 }
 0x21c   :  { %v406_v51 = vmax.f32 %v400_v47, 0.0 }
 0x21d   :  { %v405_v52 = vmax.f32 %v395_v50, 0.0  ;;  %1942 = vmatpush3.bf16.msra.mxu0 %v1941_v49  ;;  %v692_v48 = vpop.permute.xlu1 %691 }
 0x21e   :  { %1943 = vmatprep.subr.bf16.mxu0 %v2133_v34 }
 0x21f   :  { %v1944_v53 = vpack.c.bf16 %v406_v51, %v405_v52  ;;  %v687_v51 = vpop.permute.xlu0 %686 }
 0x221   :  { %1945 = vmatpush3.bf16.msra.mxu0 %v1944_v53 }
 0x224   :  { %1831 = vmatmul.mubr.msk.f32.vlgmr.msra.gmra.mrb[4].mxu0 %vm305_vm2, %v407_v54 }
 0x225   :  { %1835 = vmatprep.mubr.msk.f32.mxu0 %vm143_vm1, %v498_v55 }
 0x2f7   :  { %v483_v59 = vpop.f32.mrb[4].mxu0 }
 0x2f8   :  { %v484_v60 = vadd.f32 %v483_v59, %v412_v58  ;;  %v1832_v61 = vpop.f32.mrb[5].mxu0  ;;  %v1698_v59 = vld [vmem:[%s2434_s7 + $0x4] sm:$0xf] }
 0x2f9   :  { %v882_v61 = vpop.permute.xlu0 %881 }
 0x2fa   :  { %v495_v63 = vmul.f32 %v2002_v62, %v484_v60  ;;  %v889_v60 = vld [vmem:[#allocation2 + $0x40] sm:$0xff]  ;;  %v884_v62 = vmul.f32 %v2321_v4, %v882_v61 }
 0x2fc   :  { %v2341_v0 = vadd.f32 %v495_v63, %v2283_v3  ;;  %v665_v3 = vld [vmem:[#allocation7 + $0x20] sm:$0xff]  ;;  %2003 = vtanh.f32 %v884_v62  ;;  %v802_v63 = vpop.permute.xlu1 %801 }
 0x2fd   :  { %1849 = vmatprep.mubr.msk.f32.mxu1 %vm305_vm2, %v665_v3 }
 0x2fe   :  { %1833 = vmatprep.subr.msk.mxu0 %vm156_vm0, %v2341_v0 }
 0x2ff   :  { %1834 = vmatpush3.msk.msra.mxu0 %vm156_vm0, %v2341_v0 }
 0x300   :  { %1836 = vmatmul.mubr.msk.f32.vlgmr.msra.gmra.mrb[6].mxu0 %vm143_vm1, %v499_v1  ;;  %1954 = vmatprep.subr.bf16.mxu0 %v2133_v34 }
 0x301   :  { %1838 = vmatprep.mubr.msk.f32.mxu0 %vm143_vm1, %v500_v2 }
 0x304   :  { %1839 = vmatmul.mubr.msk.f32.gmra.mrb[8].mxu0 %vm143_vm1, %v501_v5 }
 0x305   :  { %1863 = vmatprep.mubr.msk.f32.mxu0 %vm2134_vm3, %v2135_v35 }
 0x306   :  { %v2004_v3 = vpop.eup %2003 }
 0x3d3   :  { %v1837_v13 = vpop.f32.mrb[6].mxu0 }
 0x3d4   :  { %v618_v15 = vadd.f32 %v1837_v13, %v528_v10  ;;  %v612_v16 = vpop.f32.mrb[7].mxu0  ;;  %v892_v10 = vld [vmem:[#allocation2 + $0x58] sm:$0xff] }
 0x3d5   :  { %v613_v17 = vadd.f32 %v612_v16, %v527_v11  ;;  %v906_v11 = vpop.permute.xlu1 %905 }
 0x3d6   :  { %v657_v19 = vadd.f32 %v644_v12, %v618_v15  ;;  %v901_v12 = vpop.permute.xlu0 %900  ;;  %v919_v15 = vmul.f32 %v2321_v4, %v906_v11 }
 0x3d7   :  { %v656_v21 = vadd.f32 %v639_v14, %v613_v17  ;;  %v1840_v22 = vpop.f32.mrb[8].mxu0  ;;  %v918_v16 = vmul.f32 %v2321_v4, %v901_v12 }
 0x3d8   :  { %v661_v23 = vmax.f32 %v657_v19, 0.0  ;;  %v628_v24 = vadd.f32 %v1840_v22, %v530_v18  ;;  %v622_v25 = vpop.f32.mrb[9].mxu0 }
 0x3d9   :  { %v660_v27 = vmax.f32 %v656_v21, 0.0  ;;  %v623_v28 = vadd.f32 %v622_v25, %v529_v20  ;;  %v916_v13 = vpop.permute.xlu1 %915 }
 0x3da   :  { %v659_v30 = vadd.f32 %v654_v26, %v628_v24  ;;  %v911_v14 = vpop.permute.xlu0 %910 }
 0x3db   :  { %v658_v31 = vadd.f32 %v649_v29, %v623_v28  ;;  %v1946_v32 = vpack.c.bf16 %v661_v23, %v660_v27  ;;  %v921_v23 = vmul.f32 %v2321_v4, %v916_v13  ;;  %v920_v25 = vmul.f32 %v2321_v4, %v911_v14  ;;  %v1281_v13 = vld [vmem:[#allocation2 + $0x68] sm:$0xff]  ;;  %v1282_v14 = vld [vmem:[#allocation2 + $0x70] sm:$0xff] }
 0x3dc   :  { %v663_v33 = vmax.f32 %v659_v30, 0.0 }
 0x3dd   :  { %v662_v36 = vmax.f32 %v658_v31, 0.0  ;;  %1947 = vmatprep.subr.bf16.mxu1 %v1946_v32  ;;  %v1035_v17 = vpop.permute.xlu1 %1034 }
 0x3de   :  { %1949 = vmatpush3.bf16.msra.mxu1 %v1946_v32  ;;  %v1030_v19 = vpop.permute.xlu0 %1029 }
 0x3df   :  { %v1950_v37 = vpack.c.bf16 %v663_v33, %v662_v36 }
 0x3e1   :  { %1951 = vmatprep.subr.bf16.mxu1 %v1950_v37  ;;  %v1045_v31 = vpop.permute.xlu1 %1044 }
 0x3e2   :  { %1953 = vmatpush3.bf16.msra.mxu1 %v1950_v37  ;;  %v1040_v36 = vpop.permute.xlu0 %1039 }
 0x3e5   :  { %1850 = vmatmul.mubr.msk.f32.vlgmr.msra.gmra.mrb[4].mxu1 %vm305_vm2, %v666_v38 }
 0x3e6   :  { %1852 = vmatprep.mubr.msk.f32.mxu1 %vm305_vm2, %v667_v39 }
 0x3e9   :  { %1853 = vmatmul.mubr.msk.f32.gmra.mrb[6].mxu1 %vm305_vm2, %v668_v40 }
 0x3ea   :  { %1868 = vmatprep.mubr.msk.f32.mxu1 %vm143_vm1, %v889_v60 }
 0x4b8   :  { %v1851_v43 = vpop.f32.mrb[4].mxu1 }
 0x4b9   :  { %v778_v44 = vadd.f32 %v1851_v43, %v682_v41  ;;  %v772_v45 = vpop.f32.mrb[5].mxu1  ;;  %v1057_v43 = vld [vmem:[#allocation7 + $0x48] sm:$0xff] }
 0x4ba   :  { %v773_v46 = vadd.f32 %v772_v45, %v677_v42  ;;  %v1059_v45 = vld [vmem:[#allocation7 + $0x58] sm:$0xff] }
 0x4bb   :  { %v792_v47 = vmax.f32 %v778_v44, 0.0  ;;  %v1058_v44 = vld [vmem:[#allocation7 + $0x50] sm:$0xff] }
 0x4bc   :  { %v791_v49 = vmax.f32 %v773_v46, 0.0  ;;  %v1854_v50 = vpop.f32.mrb[6].mxu1  ;;  %v1073_v46 = vpop.permute.xlu1 %1072 }
 0x4bd   :  { %v788_v52 = vadd.f32 %v1854_v50, %v692_v48  ;;  %v782_v53 = vpop.f32.mrb[7].mxu1 }
 0x4be   :  { %v1955_v54 = vpack.c.bf16 %v792_v47, %v791_v49  ;;  %v783_v55 = vadd.f32 %v782_v53, %v687_v51  ;;  %v1068_v47 = vpop.permute.xlu0 %1067 }
 0x4bf   :  { %v794_v56 = vmax.f32 %v788_v52, 0.0 }
 0x4c0   :  { %v793_v57 = vmax.f32 %v783_v55, 0.0  ;;  %1956 = vmatpush3.bf16.msra.mxu0 %v1955_v54  ;;  %v1083_v53 = vpop.permute.xlu1 %1082 }
 0x4c1   :  { %1957 = vmatprep.subr.bf16.mxu0 %v2133_v34 }
 0x4c2   :  { %v1958_v58 = vpack.c.bf16 %v794_v56, %v793_v57  ;;  %v1078_v56 = vpop.permute.xlu0 %1077 }
 0x4c4   :  { %1959 = vmatpush3.bf16.msra.mxu0 %v1958_v58 }
 0x4c7   :  { %1864 = vmatmul.mubr.msk.f32.vlgmr.msra.gmra.mrb[10].mxu0 %vm305_vm2, %v1698_v59 }
 0x59a   :  { %v873_v1 = vpop.f32.mrb[10].mxu0 }
 0x59b   :  { %v874_v2 = vadd.f32 %v873_v1, %v802_v63  ;;  %v1865_v5 = vpop.f32.mrb[11].mxu0  ;;  %v1711_v1 = vld [vmem:[%s2434_s7 + $0x8] sm:$0xf] }
 0x59c   :  { %v1273_v5 = vpop.permute.xlu0 %1272 }
 0x59d   :  { %v886_v6 = vmul.f32 %v2004_v3, %v874_v2  ;;  %v1280_v2 = vld [vmem:[#allocation2 + $0x60] sm:$0xff]  ;;  %v1275_v3 = vmul.f32 %v2321_v4, %v1273_v5 }
 0x59f   :  { %v2369_v7 = vadd.f32 %v886_v6, %v2341_v0  ;;  %v1056_v0 = vld [vmem:[#allocation7 + $0x40] sm:$0xff]  ;;  %2005 = vtanh.f32 %v1275_v3  ;;  %v1193_v6 = vpop.permute.xlu1 %1192 }
 0x5a0   :  { %1882 = vmatprep.mubr.msk.f32.mxu0 %vm305_vm2, %v1056_v0 }
 0x5a1   :  { %1866 = vmatprep.subr.msk.mxu1 %vm156_vm0, %v2369_v7 }
 0x5a2   :  { %1867 = vmatpush3.msk.msra.mxu1 %vm156_vm0, %v2369_v7 }
 0x5a3   :  { %1869 = vmatmul.mubr.msk.f32.vlgmr.msra.gmra.mrb[8].mxu1 %vm143_vm1, %v890_v8  ;;  %1968 = vmatprep.subr.bf16.mxu1 %v2133_v34 }
 0x5a4   :  { %1871 = vmatprep.mubr.msk.f32.mxu1 %vm143_vm1, %v891_v9 }
 0x5a7   :  { %1872 = vmatmul.mubr.msk.f32.gmra.mrb[10].mxu1 %vm143_vm1, %v892_v10 }
 0x5a8   :  { %1896 = vmatprep.mubr.msk.f32.mxu1 %vm2134_vm3, %v2135_v35 }
 0x5a9   :  { %v2006_v0 = vpop.eup %2005 }
 0x676   :  { %v1870_v18 = vpop.f32.mrb[8].mxu1 }
 0x677   :  { %v1009_v20 = vadd.f32 %v1870_v18, %v919_v15  ;;  %v1003_v21 = vpop.f32.mrb[9].mxu1  ;;  %v1283_v15 = vld [vmem:[#allocation2 + $0x78] sm:$0xff] }
 0x678   :  { %v1004_v22 = vadd.f32 %v1003_v21, %v918_v16  ;;  %v1297_v16 = vpop.permute.xlu1 %1296 }
 0x679   :  { %v1048_v24 = vadd.f32 %v1035_v17, %v1009_v20  ;;  %v1292_v17 = vpop.permute.xlu0 %1291  ;;  %v1310_v20 = vmul.f32 %v2321_v4, %v1297_v16 }
 0x67a   :  { %v1047_v26 = vadd.f32 %v1030_v19, %v1004_v22  ;;  %v1873_v27 = vpop.f32.mrb[10].mxu1  ;;  %v1309_v21 = vmul.f32 %v2321_v4, %v1292_v17 }
 0x67b   :  { %v1052_v28 = vmax.f32 %v1048_v24, 0.0  ;;  %v1019_v29 = vadd.f32 %v1873_v27, %v921_v23  ;;  %v1013_v30 = vpop.f32.mrb[11].mxu1 }
 0x67c   :  { %v1051_v32 = vmax.f32 %v1047_v26, 0.0  ;;  %v1014_v33 = vadd.f32 %v1013_v30, %v920_v25  ;;  %v1307_v18 = vpop.permute.xlu1 %1306 }
 0x67d   :  { %v1050_v37 = vadd.f32 %v1045_v31, %v1019_v29  ;;  %v1302_v19 = vpop.permute.xlu0 %1301 }
 0x67e   :  { %v1049_v38 = vadd.f32 %v1040_v36, %v1014_v33  ;;  %v1960_v39 = vpack.c.bf16 %v1052_v28, %v1051_v32  ;;  %v1312_v28 = vmul.f32 %v2321_v4, %v1307_v18  ;;  %v1311_v29 = vmul.f32 %v2321_v4, %v1302_v19 }
 0x67f   :  { %v1054_v40 = vmax.f32 %v1050_v37, 0.0 }
 0x680   :  { %v1053_v41 = vmax.f32 %v1049_v38, 0.0  ;;  %1961 = vmatprep.subr.bf16.mxu0 %v1960_v39  ;;  %v1426_v22 = vpop.permute.xlu1 %1425 }
 0x681   :  { %1963 = vmatpush3.bf16.msra.mxu0 %v1960_v39  ;;  %v1421_v24 = vpop.permute.xlu0 %1420 }
 0x682   :  { %v1964_v42 = vpack.c.bf16 %v1054_v40, %v1053_v41 }
 0x684   :  { %1965 = vmatprep.subr.bf16.mxu0 %v1964_v42  ;;  %v1436_v37 = vpop.permute.xlu1 %1435 }
 0x685   :  { %1967 = vmatpush3.bf16.msra.mxu0 %v1964_v42  ;;  %v1431_v40 = vpop.permute.xlu0 %1430 }
 0x688   :  { %1883 = vmatmul.mubr.msk.f32.vlgmr.msra.gmra.mrb[12].mxu0 %vm305_vm2, %v1057_v43 }
 0x689   :  { %1885 = vmatprep.mubr.msk.f32.mxu0 %vm305_vm2, %v1058_v44 }
 0x68c   :  { %1886 = vmatmul.mubr.msk.f32.gmra.mrb[14].mxu0 %vm305_vm2, %v1059_v45 }
 0x75b   :  { %v1884_v48 = vpop.f32.mrb[12].mxu0 }
 0x75c   :  { %v1169_v49 = vadd.f32 %v1884_v48, %v1073_v46  ;;  %v1163_v50 = vpop.f32.mrb[13].mxu0  ;;  %v1449_v48 = vld [vmem:[#allocation7 + $0x70] sm:$0xff] }
 0x75d   :  { %v1164_v51 = vadd.f32 %v1163_v50, %v1068_v47  ;;  %v1448_v47 = vld [vmem:[#allocation7 + $0x68] sm:$0xff]  ;;  %v1464_v50 = vpop.permute.xlu1 %1463 }
 0x75e   :  { %v1183_v52 = vmax.f32 %v1169_v49, 0.0  ;;  %v1450_v49 = vld [vmem:[#allocation7 + $0x78] sm:$0xff] }
 0x75f   :  { %v1182_v54 = vmax.f32 %v1164_v51, 0.0  ;;  %v1887_v55 = vpop.f32.mrb[14].mxu0  ;;  %v1459_v51 = vpop.permute.xlu0 %1458 }
 0x760   :  { %v1179_v57 = vadd.f32 %v1887_v55, %v1083_v53  ;;  %v1173_v58 = vpop.f32.mrb[15].mxu0 }
 0x761   :  { %v1969_v59 = vpack.c.bf16 %v1183_v52, %v1182_v54  ;;  %v1174_v60 = vadd.f32 %v1173_v58, %v1078_v56 }
 0x762   :  { %v1185_v61 = vmax.f32 %v1179_v57, 0.0  ;;  %v1474_v57 = vpop.permute.xlu1 %1473 }
 0x763   :  { %v1184_v62 = vmax.f32 %v1174_v60, 0.0  ;;  %1970 = vmatpush3.bf16.msra.mxu1 %v1969_v59  ;;  %v1469_v60 = vpop.permute.xlu0 %1468 }
 0x764   :  { %1971 = vmatprep.subr.bf16.mxu1 %v2133_v34 }
 0x765   :  { %v1972_v63 = vpack.c.bf16 %v1185_v61, %v1184_v62 }
 0x767   :  { %1973 = vmatpush3.bf16.msra.mxu1 %v1972_v63 }
 0x76a   :  { %1897 = vmatmul.mubr.msk.f32.vlgmr.msra.gmra.mrb[12].mxu1 %vm305_vm2, %v1711_v1 }
 0x76b   :  { %1901 = vmatprep.mubr.msk.f32.mxu1 %vm143_vm1, %v1280_v2 }
 0x83d   :  { %v1264_v8 = vpop.f32.mrb[12].mxu1 }
 0x83e   :  { %v1265_v9 = vadd.f32 %v1264_v8, %v1193_v6  ;;  %v1898_v10 = vpop.f32.mrb[13].mxu1  ;;  %v1724_v6 = vld [vmem:[%s2434_s7 + $0xc] sm:$0xf]  ;;  %v1664_v8 = vpop.permute.xlu0 %1663 }
 0x83f   :  { %v1584_v10 = vpop.permute.xlu1 %1583 }
 0x840   :  { %v1277_v11 = vmul.f32 %v2006_v0, %v1265_v9  ;;  %v1666_v9 = vmul.f32 %v2321_v4, %v1664_v8 }
 0x842   :  { %v2397_v12 = vadd.f32 %v1277_v11, %v2369_v7  ;;  %v1447_v7 = vld [vmem:[#allocation7 + $0x60] sm:$0xff]  ;;  %2007 = vtanh.f32 %v1666_v9 }
 0x843   :  { %1915 = vmatprep.mubr.msk.f32.mxu0 %vm305_vm2, %v1447_v7 }
 0x844   :  { %1899 = vmatprep.subr.msk.mxu1 %vm156_vm0, %v2397_v12 }
 0x845   :  { %1900 = vmatpush3.msk.msra.mxu1 %vm156_vm0, %v2397_v12 }
 0x846   :  { %1902 = vmatmul.mubr.msk.f32.vlgmr.msra.gmra.mrb[14].mxu1 %vm143_vm1, %v1281_v13  ;;  %1982 = vmatprep.subr.bf16.mxu1 %v2133_v34 }
 0x847   :  { %1904 = vmatprep.mubr.msk.f32.mxu1 %vm143_vm1, %v1282_v14 }
 0x84a   :  { %1905 = vmatmul.mubr.msk.f32.gmra.mrb[16].mxu1 %vm143_vm1, %v1283_v15 }
 0x84b   :  { %1929 = vmatprep.mubr.msk.f32.mxu1 %vm2134_vm3, %v2135_v35 }
 0x84c   :  { %v2008_v14 = vpop.eup %2007 }
 0x919   :  { %v1903_v23 = vpop.f32.mrb[14].mxu1 }
 0x91a   :  { %v1400_v25 = vadd.f32 %v1903_v23, %v1310_v20  ;;  %v1394_v26 = vpop.f32.mrb[15].mxu1 }
 0x91b   :  { %v1395_v27 = vadd.f32 %v1394_v26, %v1309_v21 }
 0x91c   :  { %v1439_v35 = vadd.f32 %v1426_v22, %v1400_v25 }
 0x91d   :  { %v1438_v30 = vadd.f32 %v1421_v24, %v1395_v27  ;;  %v1906_v31 = vpop.f32.mrb[16].mxu1 }
 0x91e   :  { %v1443_v32 = vmax.f32 %v1439_v35, 0.0  ;;  %v1410_v33 = vadd.f32 %v1906_v31, %v1312_v28  ;;  %v1404_v36 = vpop.f32.mrb[17].mxu1 }
 0x91f   :  { %v1442_v38 = vmax.f32 %v1438_v30, 0.0  ;;  %v1405_v39 = vadd.f32 %v1404_v36, %v1311_v29 }
 0x920   :  { %v1441_v41 = vadd.f32 %v1436_v37, %v1410_v33 }
 0x921   :  { %v1440_v42 = vadd.f32 %v1431_v40, %v1405_v39  ;;  %v1974_v43 = vpack.c.bf16 %v1443_v32, %v1442_v38 }
 0x922   :  { %v1445_v44 = vmax.f32 %v1441_v41, 0.0 }
 0x923   :  { %v1444_v45 = vmax.f32 %v1440_v42, 0.0  ;;  %1975 = vmatprep.subr.bf16.mxu0 %v1974_v43 }
 0x924   :  { %1977 = vmatpush3.bf16.msra.mxu0 %v1974_v43 }
 0x925   :  { %v1978_v46 = vpack.c.bf16 %v1445_v44, %v1444_v45 }
 0x927   :  { %1979 = vmatprep.subr.bf16.mxu0 %v1978_v46 }
 0x928   :  { %1981 = vmatpush3.bf16.msra.mxu0 %v1978_v46 }
 0x92b   :  { %1916 = vmatmul.mubr.msk.f32.vlgmr.msra.gmra.mrb[16].mxu0 %vm305_vm2, %v1448_v47 }
 0x92c   :  { %1918 = vmatprep.mubr.msk.f32.mxu0 %vm305_vm2, %v1449_v48 }
 0x92f   :  { %1919 = vmatmul.mubr.msk.f32.gmra.mrb[18].mxu0 %vm305_vm2, %v1450_v49 }
 0x9fe   :  { %v1917_v52 = vpop.f32.mrb[16].mxu0 }
 0x9ff   :  { %v1560_v53 = vadd.f32 %v1917_v52, %v1464_v50  ;;  %v1554_v54 = vpop.f32.mrb[17].mxu0 }
 0xa00   :  { %v1555_v55 = vadd.f32 %v1554_v54, %v1459_v51 }
 0xa01   :  { %v1574_v56 = vmax.f32 %v1560_v53, 0.0 }
 0xa02   :  { %v1573_v58 = vmax.f32 %v1555_v55, 0.0  ;;  %v1920_v59 = vpop.f32.mrb[18].mxu0 }
 0xa03   :  { %v1570_v61 = vadd.f32 %v1920_v59, %v1474_v57  ;;  %v1564_v62 = vpop.f32.mrb[19].mxu0 }
 0xa04   :  { %v1983_v63 = vpack.c.bf16 %v1574_v56, %v1573_v58  ;;  %v1565_v1 = vadd.f32 %v1564_v62, %v1469_v60 }
 0xa05   :  { %v1576_v2 = vmax.f32 %v1570_v61, 0.0 }
 0xa06   :  { %v1575_v5 = vmax.f32 %v1565_v1, 0.0  ;;  %1984 = vmatpush3.bf16.msra.mxu1 %v1983_v63 }
 0xa07   :  { %1985 = vmatprep.subr.bf16.mxu1 %v2133_v34 }
 0xa08   :  { %v1986_v3 = vpack.c.bf16 %v1576_v2, %v1575_v5 }
 0xa0a   :  { %1987 = vmatpush3.bf16.msra.mxu1 %v1986_v3 }
 0xa0d   :  { %1930 = vmatmul.mubr.msk.f32.vlgmr.msra.gmra.mrb[18].mxu1 %vm305_vm2, %v1724_v6 }
 0xae0   :  { %v1655_v0 = vpop.f32.mrb[18].mxu1 }
 0xae1   :  { %v1656_v11 = vadd.f32 %v1655_v0, %v1584_v10  ;;  %v1931_v13 = vpop.f32.mrb[19].mxu1 }
 0xae3   :  { %v1668_v15 = vmul.f32 %v2008_v14, %v1656_v11 }
 0xae5   :  { %v1669_v34 = vadd.f32 %v1668_v15, %v2397_v12 }
 0xae7   :  { %1670 = vst [vmem:[%s2437_s10] sm:$0xf] %v1669_v34 }
 0xae8   :  { %1675 = vsyncpa [#allocation3], 1 }
 0xae9   :  { %1676 = vsyncpa [#allocation5], 1 }
 0xaea   :  { %1677 = vsyncpa [#allocation8], 1 }

</bundles_post_ra>
